<compile_context>
chip_gen: v7x
topology: tpu7x:2x2x1
jax: 0.10.0
libtpu: 0.0.40
codegen_flags: <defaults>
</compile_context>

<pallas_src>
import jax
import jax.numpy as jnp
from jax.experimental import pallas as pl
from jax.experimental.pallas import tpu as pltpu


LANES = 128
TILE_ROWS = 2048       # rows per grid step; 2048*128*4B = 1 MiB per f32 block
MAX_CORE_SPLIT = 2     # leading "parallel" axis -> megacore split on v7x


def _make_focal_kernel(tile_rows):
    nfold = tile_rows // 8

    def kernel(pred_ref, gt_ref, loss_ref, npos_ref):
        @pl.when(pl.program_id(1) == 0)
        def _():
            loss_ref[...] = jnp.zeros_like(loss_ref)
            npos_ref[...] = jnp.zeros_like(npos_ref)

        p = pred_ref[...].astype(jnp.float32)
        g = gt_ref[...].astype(jnp.float32)

        # NOTE: assumes gt is a heatmap in [0, 1] (CornerNet convention), so
        # (1-g)^4 == 0 exactly where g == 1 and the explicit (g < 1) negative
        # mask is redundant.
        is_pos = g == 1.0
        pos_f = is_pos.astype(jnp.float32)
        one_minus_p = 1.0 - p
        one_minus_g = 1.0 - g
        sq_g = one_minus_g * one_minus_g
        neg_w = sq_g * sq_g                      # (1 - g)^4

        eps = 1e-12
        # pos/neg branches are mutually exclusive -> one fused EUP log.
        log_term = jnp.log(jnp.where(is_pos, p, one_minus_p) + eps)
        weight = jnp.where(is_pos, one_minus_p * one_minus_p, (p * p) * neg_w)
        loss_elem = log_term * weight            # = pos_loss + neg_loss per elem

        def fold(x):
            # (tile_rows, 128) -> (tile_rows//8, 8, 128) keeps the native
            # (8, 128) vreg tiling, so the sum over axis 0 is pure VPU adds.
            return x.reshape(nfold, 8, LANES).sum(axis=0)[None]

        # Outputs are resident across the reduction axis (index constant in i):
        # in-VMEM accumulation, no cross-lane reduce inside the loop.
        loss_ref[...] += fold(loss_elem)
        npos_ref[...] += fold(pos_f)

    return kernel


def _partial_sums_jax(pred_flat, gt_flat):
    """Exact reference math for the small leftover region (plain JAX)."""
    p = pred_flat.astype(jnp.float32)
    g = gt_flat.astype(jnp.float32)
    pos_inds = (g == 1.0).astype(jnp.float32)
    neg_inds = (g < 1.0).astype(jnp.float32)
    neg_w = (1.0 - g) ** 4
    eps = 1e-12
    pos_l = jnp.log(p + eps) * (1.0 - p) ** 2 * pos_inds
    neg_l = jnp.log(1.0 - p + eps) * p ** 2 * neg_w * neg_inds
    return jnp.sum(pos_l) + jnp.sum(neg_l), jnp.sum(pos_inds)


def focal_loss(pred, gt, *, tile_rows=TILE_ROWS):
    """Forward pass of FocalLoss. pred, gt: same shape (e.g. NCHW)."""
    assert pred.shape == gt.shape
    # Keep native dtype (bf16 inputs halve HBM reads); upcast happens in-kernel.
    pred_flat = pred.reshape(-1)
    gt_flat = gt.reshape(-1)
    n = pred_flat.shape[0]

    rows = n // LANES                              # full lane-dense rows
    total_loss = jnp.float32(0.0)
    num_pos = jnp.float32(0.0)
    rows_kernel = 0

    if rows >= 8:
        # Tile: multiple of 8 sublanes, at most `rows`, at most TILE_ROWS.
        tr = min(tile_rows, (rows // 8) * 8)
        num_tiles = rows // tr
        num_split = MAX_CORE_SPLIT if num_tiles >= MAX_CORE_SPLIT else 1
        steps_per_core = num_tiles // num_split
        rows_kernel = num_split * steps_per_core * tr

        if rows * LANES == n:
            # Common case: zero-copy lane-dense view; grid only visits the
            # first num_split*steps_per_core full tiles, the ragged remainder
            # rows are never touched by the kernel.
            view_rows = rows
            pred2d = pred_flat.reshape(rows, LANES)
            gt2d = gt_flat.reshape(rows, LANES)
        else:
            # Rare misaligned case: slice the tile-aligned prefix (the <128
            # lane tail plus remainder rows are handled in plain JAX below).
            view_rows = rows_kernel
            pred2d = pred_flat[: rows_kernel * LANES].reshape(rows_kernel, LANES)
            gt2d = gt_flat[: rows_kernel * LANES].reshape(rows_kernel, LANES)
        del view_rows

        in_spec = pl.BlockSpec(
            (tr, LANES), lambda c, i: (c * steps_per_core + i, 0))
        # Per-core partial-sum block: lane-dense (8, 128), varies only with the
        # core axis -> resident accumulator across the reduction axis.
        out_spec = pl.BlockSpec((1, 8, LANES), lambda c, i: (c, 0, 0))
        out_shape = jax.ShapeDtypeStruct((num_split, 8, LANES), jnp.float32)

        loss_p, npos_p = pl.pallas_call(
            _make_focal_kernel(tr),
            out_shape=(out_shape, out_shape),
            grid_spec=pltpu.PrefetchScalarGridSpec(
                num_scalar_prefetch=0,
                grid=(num_split, steps_per_core),
                in_specs=[in_spec, in_spec],
                out_specs=[out_spec, out_spec],
            ),
            compiler_params=pltpu.CompilerParams(
                dimension_semantics=("parallel", "arbitrary")),
        )(pred2d, gt2d)

        total_loss = jnp.sum(loss_p)
        num_pos = jnp.sum(npos_p)

    # Leftover (< num_split*tile_rows rows + <128 lane tail): plain JAX.
    n_kernel = rows_kernel * LANES
    if n_kernel < n:
        loss_t, npos_t = _partial_sums_jax(pred_flat[n_kernel:],
                                           gt_flat[n_kernel:])
        total_loss = total_loss + loss_t
        num_pos = num_pos + npos_t

    # num_pos == 0  =>  the positive part contributed exactly 0, so -total_loss
    # covers both arms; max(num_pos, 1) keeps the unselected branch NaN-free.
    return jnp.where(num_pos == 0.0,
                     -total_loss,
                     -total_loss / jnp.maximum(num_pos, 1.0))


def _focal_loss_ref(pred, gt):
    """Pure-JAX reference mirroring the PyTorch forward."""
    pred = pred.astype(jnp.float32)
    gt = gt.astype(jnp.float32)
    pos_inds = (gt == 1.0).astype(jnp.float32)
    neg_inds = (gt < 1.0).astype(jnp.float32)
    neg_weights = (1.0 - gt) ** 4
    eps = 1e-12
    pos_loss = jnp.sum(jnp.log(pred + eps) * (1.0 - pred) ** 2 * pos_inds)
    neg_loss = jnp.sum(jnp.log(1.0 - pred + eps) * pred ** 2 * neg_weights * neg_inds)
    num_pos = jnp.sum(pos_inds)
    return jnp.where(num_pos == 0.0, -neg_loss, -(pos_loss + neg_loss) / num_pos)


if __name__ == "__main__":
    key = jax.random.PRNGKey(0)
    kp, kg, km, kp2, kg2, km2 = jax.random.split(key, 6)

    # Primary check: NCHW heatmap, numel a multiple of 128 (zero-copy path).
    N, C, H, W = 2, 4, 16, 16
    pred = jax.random.uniform(kp, (N, C, H, W), jnp.float32, 1e-4, 1.0 - 1e-4)
    gt = jax.random.uniform(kg, (N, C, H, W), jnp.float32, 0.0, 1.0)
    peaks = jax.random.bernoulli(km, 0.02, (N, C, H, W))
    gt = jnp.where(peaks, 1.0, gt * 0.999)

    out = jax.block_until_ready(focal_loss(pred, gt))
    ref = jax.block_until_ready(_focal_loss_ref(pred, gt))
    assert jnp.allclose(out, ref, rtol=1e-5, atol=1e-5), (out, ref)

    # Ragged check: numel not a multiple of 128 (exercises prefix + JAX tail).
    shape2 = (3, 5, 17, 13)
    pred2 = jax.random.uniform(kp2, shape2, jnp.float32, 1e-4, 1.0 - 1e-4)
    gt2 = jax.random.uniform(kg2, shape2, jnp.float32, 0.0, 1.0)
    gt2 = jnp.where(jax.random.bernoulli(km2, 0.02, shape2), 1.0, gt2 * 0.999)

    out2 = jax.block_until_ready(focal_loss(pred2, gt2))
    ref2 = jax.block_until_ready(_focal_loss_ref(pred2, gt2))
    assert jnp.allclose(out2, ref2, rtol=1e-5, atol=1e-5), (out2, ref2)

    print("KERNEL_OK")
</pallas_src>

<mosaic_0001>
module attributes {stable_mosaic.version = 11 : i64} {
  func.func @kernel(%arg0: i32, %arg1: i32, %arg2: memref<16x128xf32, #tpu.memory_space<vmem>>, %arg3: memref<16x128xf32, #tpu.memory_space<vmem>>, %arg4: memref<1x8x128xf32, #tpu.memory_space<vmem>>, %arg5: memref<1x8x128xf32, #tpu.memory_space<vmem>>) attributes {dimension_semantics = [#tpu.dimension_semantics<parallel>, #tpu.dimension_semantics<arbitrary>], iteration_bounds = array<i64: 1, 1>, scalar_prefetch = 0 : i64, scratch_operands = 0 : i64, tpu.core_type = #tpu.core_type<tc>, window_params = [{transform_indices = @transform_0, window_bounds = array<i64: 16, 128>}, {transform_indices = @transform_1, window_bounds = array<i64: 16, 128>}, {transform_indices = @transform_2, window_bounds = array<i64: 1, 8, 128>}, {transform_indices = @transform_3, window_bounds = array<i64: 1, 8, 128>}]} {
    %c0_i32 = arith.constant 0 : i32
    %0 = arith.cmpi eq, %arg1, %c0_i32 : i32
    %1 = arith.extui %0 : i1 to i32
    %c0_i32_0 = arith.constant 0 : i32
    %2 = arith.cmpi ne, %1, %c0_i32_0 : i32
    scf.if %2 {
      %cst_21 = arith.constant 0.000000e+00 : f32
      %36 = vector.broadcast %cst_21 : f32 to vector<1x8x128xf32>
      %c0_22 = arith.constant 0 : index
      %c0_23 = arith.constant 0 : index
      %c0_24 = arith.constant 0 : index
      %37 = vector.load %arg4[%c0_22, %c0_23, %c0_24] : memref<1x8x128xf32, #tpu.memory_space<vmem>>, vector<1x8x128xf32>
      tpu.vector_store %arg4[%c0_22, %c0_23, %c0_24], %36 {strides = array<i32>} : memref<1x8x128xf32, #tpu.memory_space<vmem>>, vector<1x8x128xf32>,
      %cst_25 = arith.constant 0.000000e+00 : f32
      %38 = vector.broadcast %cst_25 : f32 to vector<1x8x128xf32>
      %c0_26 = arith.constant 0 : index
      %c0_27 = arith.constant 0 : index
      %c0_28 = arith.constant 0 : index
      %39 = vector.load %arg5[%c0_26, %c0_27, %c0_28] : memref<1x8x128xf32, #tpu.memory_space<vmem>>, vector<1x8x128xf32>
      tpu.vector_store %arg5[%c0_26, %c0_27, %c0_28], %38 {strides = array<i32>} : memref<1x8x128xf32, #tpu.memory_space<vmem>>, vector<1x8x128xf32>,
    } else {
    }
    %c0 = arith.constant 0 : index
    %c0_1 = arith.constant 0 : index
    %3 = vector.load %arg2[%c0, %c0_1] : memref<16x128xf32, #tpu.memory_space<vmem>>, vector<16x128xf32>
    %c0_2 = arith.constant 0 : index
    %c0_3 = arith.constant 0 : index
    %4 = vector.load %arg3[%c0_2, %c0_3] : memref<16x128xf32, #tpu.memory_space<vmem>>, vector<16x128xf32>
    %cst = arith.constant 1.000000e+00 : f32
    %5 = vector.broadcast %cst : f32 to vector<16x128xf32>
    %6 = arith.cmpf oeq, %4, %5 : vector<16x128xf32>
    %7 = arith.extui %6 : vector<16x128xi1> to vector<16x128xi32>
    %8 = arith.sitofp %7 : vector<16x128xi32> to vector<16x128xf32>
    %cst_4 = arith.constant 1.000000e+00 : f32
    %9 = vector.broadcast %cst_4 : f32 to vector<16x128xf32>
    %10 = arith.subf %9, %3 : vector<16x128xf32>
    %cst_5 = arith.constant 1.000000e+00 : f32
    %11 = vector.broadcast %cst_5 : f32 to vector<16x128xf32>
    %12 = arith.subf %11, %4 : vector<16x128xf32>
    %13 = arith.mulf %12, %12 : vector<16x128xf32>
    %14 = arith.mulf %13, %13 : vector<16x128xf32>
    %15 = arith.select %6, %3, %10 : vector<16x128xi1>, vector<16x128xf32>
    %cst_6 = arith.constant 9.99999996E-13 : f32
    %16 = vector.broadcast %cst_6 : f32 to vector<16x128xf32>
    %17 = arith.addf %15, %16 : vector<16x128xf32>
    %18 = math.log %17 : vector<16x128xf32>
    %19 = arith.mulf %10, %10 : vector<16x128xf32>
    %20 = arith.mulf %3, %3 : vector<16x128xf32>
    %21 = arith.mulf %20, %14 : vector<16x128xf32>
    %22 = arith.select %6, %19, %21 : vector<16x128xi1>, vector<16x128xf32>
    %23 = arith.mulf %18, %22 : vector<16x128xf32>
    %c0_7 = arith.constant 0 : index
    %c0_8 = arith.constant 0 : index
    %c0_9 = arith.constant 0 : index
    %24 = vector.load %arg4[%c0_7, %c0_8, %c0_9] : memref<1x8x128xf32, #tpu.memory_space<vmem>>, vector<1x8x128xf32>
    %25 = vector.shape_cast %23 : vector<16x128xf32> to vector<2x8x128xf32>
    %cst_10 = arith.constant dense<0.000000e+00> : vector<8x128xf32>
    %26 = vector.multi_reduction <add>, %25, %cst_10 [0] : vector<2x8x128xf32> to vector<8x128xf32>
    %27 = vector.shape_cast %26 : vector<8x128xf32> to vector<1x8x128xf32>
    %28 = arith.addf %24, %27 : vector<1x8x128xf32>
    %c0_11 = arith.constant 0 : index
    %c0_12 = arith.constant 0 : index
    %c0_13 = arith.constant 0 : index
    %29 = vector.load %arg4[%c0_11, %c0_12, %c0_13] : memref<1x8x128xf32, #tpu.memory_space<vmem>>, vector<1x8x128xf32>
    tpu.vector_store %arg4[%c0_11, %c0_12, %c0_13], %28 {strides = array<i32>} : memref<1x8x128xf32, #tpu.memory_space<vmem>>, vector<1x8x128xf32>,
    %c0_14 = arith.constant 0 : index
    %c0_15 = arith.constant 0 : index
    %c0_16 = arith.constant 0 : index
    %30 = vector.load %arg5[%c0_14, %c0_15, %c0_16] : memref<1x8x128xf32, #tpu.memory_space<vmem>>, vector<1x8x128xf32>
    %31 = vector.shape_cast %8 : vector<16x128xf32> to vector<2x8x128xf32>
    %cst_17 = arith.constant dense<0.000000e+00> : vector<8x128xf32>
    %32 = vector.multi_reduction <add>, %31, %cst_17 [0] : vector<2x8x128xf32> to vector<8x128xf32>
    %33 = vector.shape_cast %32 : vector<8x128xf32> to vector<1x8x128xf32>
    %34 = arith.addf %30, %33 : vector<1x8x128xf32>
    %c0_18 = arith.constant 0 : index
    %c0_19 = arith.constant 0 : index
    %c0_20 = arith.constant 0 : index
    %35 = vector.load %arg5[%c0_18, %c0_19, %c0_20] : memref<1x8x128xf32, #tpu.memory_space<vmem>>, vector<1x8x128xf32>
    tpu.vector_store %arg5[%c0_18, %c0_19, %c0_20], %34 {strides = array<i32>} : memref<1x8x128xf32, #tpu.memory_space<vmem>>, vector<1x8x128xf32>,
    return
  }
  func.func @transform_0(%arg0: i32, %arg1: i32) -> (i32, i32) {
    %c1_i32 = arith.constant 1 : i32
    %0 = arith.muli %arg0, %c1_i32 : i32
    %1 = arith.addi %0, %arg1 : i32
    %c0_i32 = arith.constant 0 : i32
    %c0_i32_0 = arith.constant 0 : i32
    return %1, %c0_i32 : i32, i32
  }
  func.func @transform_1(%arg0: i32, %arg1: i32) -> (i32, i32) {
    %c1_i32 = arith.constant 1 : i32
    %0 = arith.muli %arg0, %c1_i32 : i32
    %1 = arith.addi %0, %arg1 : i32
    %c0_i32 = arith.constant 0 : i32
    %c0_i32_0 = arith.constant 0 : i32
    return %1, %c0_i32 : i32, i32
  }
  func.func @transform_2(%arg0: i32, %arg1: i32) -> (i32, i32, i32) {
    %c0_i32 = arith.constant 0 : i32
    %c0_i32_0 = arith.constant 0 : i32
    %c0_i32_1 = arith.constant 0 : i32
    return %arg0, %c0_i32, %c0_i32_0 : i32, i32, i32
  }
  func.func @transform_3(%arg0: i32, %arg1: i32) -> (i32, i32, i32) {
    %c0_i32 = arith.constant 0 : i32
    %c0_i32_0 = arith.constant 0 : i32
    %c0_i32_1 = arith.constant 0 : i32
    return %arg0, %c0_i32, %c0_i32_0 : i32, i32, i32
  }
}

</mosaic_0001>

<bundles_post_ra>
// kernel: tpu_custom_call.1
= control target key start
LH: loop header
LB: loop body
LE: loop exit
PB: predicated region body
PF: predicated region fallthrough
CT: control target
= control target key end

     0   :  { %9 = vsyncpa [#allocation3], 0  ;;  %s325_s0 = inlined_call_operand.hbm [shape: f32[16,128], index: 0, kind: input, shape index: {}]   ;;  %s326_s1 = inlined_call_operand.hbm [shape: f32[16,128], index: 1, kind: input, shape index: {}]   ;;  %s327_s2 = inlined_call_operand.hbm [shape: f32[1,8,128], index: 2, kind: output, shape index: {0}]   ;;  %s328_s3 = inlined_call_operand.hbm [shape: f32[1,8,128], index: 3, kind: output, shape index: {1}]  }
   0x1   :  { %10 = vsyncpa [#allocation6], 0 }
   0x2   :  { %11 = vsyncpa [#allocation4], 0 }
   0x3   :  { %12 = vsyncpa [#allocation9], 0  ;;  %s244_s12 = smov [#allocation2]   ;;  %s148_s16 = scalar_lea.hbm %s325_s0, 256 }
   0x4   :  { %s22_s13 = sshll.u32 %s244_s12, 4  ;;  %p149_p0 = scmp.ne.s32.totalorder %s325_s0, %s148_s16  ;;  %s23_s13 = int_to_ptr.vmem [resolvable:$true] %s22_s13 }
   0x5   :  { %p152_p1 = scmp.lt.u32.totalorder %s148_s16, %s325_s0 }
   0x7   :  { %p154_p2 = pnand %p152_p1, %p149_p0 }
   0x9   :  { %157 = shalt.err (!%p154_p2)
}
   0xa   :  { %s158_s21 = scalar_lea.vmem %s23_s13, 256  ;;  %p163_p4 = scmp.lt.s32.totalorder %s23_s13, %s23_s13 }
   0xb   :  { %p159_p3 = scmp.ne.s32.totalorder %s23_s13, %s158_s21  ;;  %p164_p5 = scmp.lt.s32.totalorder %s158_s21, %s158_s21 }
   0xd   :  { %p165_p6 = por %p164_p5, %p163_p4 }
   0xf   :  { %p166_p7 = pnand %p165_p6, %p159_p3 }
  0x11   :  { %169 = shalt.err (!%p166_p7)
}
  0x12   :  { %s245_s22 = smov 128   ;;  %s246_s23 = smov 8  }
  0x13   :  { %28 = dma.hbm_to_vmem [thread:$0]  %s325_s0, 256, %s23_s13, [#allocation3], %s245_s22, %s245_s22, %s246_s23  }
  0x14   :  { %s247_s26 = smov [#allocation5]   ;;  %s170_s30 = scalar_lea.hbm %s326_s1, 256 }
  0x15   :  { %s38_s27 = sshll.u32 %s247_s26, 4  ;;  %p171_p8 = scmp.ne.s32.totalorder %s326_s1, %s170_s30  ;;  %s39_s27 = int_to_ptr.vmem [resolvable:$true] %s38_s27 }
  0x16   :  { %p174_p9 = scmp.lt.u32.totalorder %s170_s30, %s326_s1 }
  0x18   :  { %p176_p10 = pnand %p174_p9, %p171_p8 }
  0x1a   :  { %179 = shalt.err (!%p176_p10)
}
  0x1b   :  { %s180_s8 = scalar_lea.vmem %s39_s27, 256  ;;  %p185_p12 = scmp.lt.s32.totalorder %s39_s27, %s39_s27 }
  0x1c   :  { %p181_p11 = scmp.ne.s32.totalorder %s39_s27, %s180_s8  ;;  %p186_p13 = scmp.lt.s32.totalorder %s180_s8, %s180_s8 }
  0x1e   :  { %p187_p0 = por %p186_p13, %p185_p12 }
  0x20   :  { %p188_p1 = pnand %p187_p0, %p181_p11 }
  0x22   :  { %191 = shalt.err (!%p188_p1)
}
  0x23   :  { %44 = dma.hbm_to_vmem [thread:$0]  %s326_s1, 256, %s39_s27, [#allocation6], %s245_s22, %s245_s22, %s246_s23  }
  0x24   :  { %236 = dma.done.wait [#allocation3], 256  }
  0x25   :  { %237 = vsyncadd [#allocation3], 4294967040 }
  0x26   :  { %238 = dma.done.wait [#allocation6], 256  }
  0x27   :  { %239 = vsyncadd [#allocation6], 4294967040  ;;  %v61_v0 = vld [vmem:[#allocation2] sm:$0xff]  ;;  %v62_v1 = vld [vmem:[#allocation2 + $0x8] sm:$0xff]  ;;  %v248_v14 = vmov 0.0   ;;  %s249_s1 = smov [#allocation8]  }
  0x28   :  { %v63_v2 = vld [vmem:[#allocation5] sm:$0xff]  ;;  %v64_v3 = vld [vmem:[#allocation5 + $0x8] sm:$0xff]  ;;  %v71_v4 = vsub.f32 1.0, %v61_v0  ;;  %v72_v5 = vsub.f32 1.0, %v62_v1  ;;  %s121_s10 = sshll.u32 %s249_s1, 4  ;;  %v89_v19 = vmul.f32 %v61_v0, %v61_v0  ;;  %v90_v21 = vmul.f32 %v62_v1, %v62_v1  ;;  %s122_s10 = int_to_ptr.vmem [resolvable:$true] %s121_s10 }
  0x29   :  { %vm65_vm0 = vcmp.eq.f32.partialorder %v63_v2, 1.0  ;;  %v73_v6 = vsub.f32 1.0, %v63_v2  ;;  %vm66_vm1 = vcmp.eq.f32.partialorder %v64_v3, 1.0  ;;  %v74_v7 = vsub.f32 1.0, %v64_v3  ;;  %s192_s11 = scalar_lea.vmem %s122_s10, 128  ;;  %p197_p3 = scmp.lt.s32.totalorder %s122_s10, %s122_s10 }
  0x2a   :  { %v79_v8 = vsel %vm65_vm0, %v61_v0, %v71_v4  ;;  %v80_v9 = vsel %vm66_vm1, %v62_v1, %v72_v5  ;;  %v135_v15 = vsel %vm65_vm0, 1.0, %v248_v14  ;;  %v136_v16 = vsel %vm66_vm1, 1.0, %v248_v14  ;;  %p193_p2 = scmp.ne.s32.totalorder %s122_s10, %s192_s11  ;;  %p198_p4 = scmp.lt.s32.totalorder %s192_s11, %s192_s11 }
  0x2b   :  { %v75_v10 = vmul.f32 %v73_v6, %v73_v6  ;;  %v81_v11 = vadd.f32 1e-12, %v79_v8  ;;  %v82_v12 = vadd.f32 1e-12, %v80_v9  ;;  %v76_v13 = vmul.f32 %v74_v7, %v74_v7 }
  0x2c   :  { %v102_v17 = vadd.f32 %v136_v16, %v135_v15  ;;  %p199_p5 = por %p198_p4, %p197_p3 }
  0x2d   :  { %144 = vlog2.f32 %v81_v11  ;;  %v77_v18 = vmul.f32 %v75_v10, %v75_v10  ;;  %v78_v20 = vmul.f32 %v76_v13, %v76_v13 }
  0x2e   :  { %146 = vlog2.f32 %v82_v12  ;;  %104 = vst [vmem:[#allocation8] sm:$0xff] %v102_v17  ;;  %p200_p6 = pnand %p199_p5, %p193_p2 }
  0x30   :  { %203 = shalt.err (!%p200_p6)
}
  0x31   :  { %s204_s14 = scalar_lea.hbm %s328_s3, 128 }
  0x32   :  { %p205_p7 = scmp.ne.s32.totalorder %s328_s3, %s204_s14  ;;  %p208_p8 = scmp.lt.u32.totalorder %s204_s14, %s328_s3 }
  0x34   :  { %p210_p9 = pnand %p208_p8, %p205_p7 }
  0x36   :  { %213 = shalt.err (!%p210_p9)
}
  0x37   :  { %124 = dma.vmem_to_hbm [thread:$0]  %s122_s10, 128, %s328_s3, [#allocation9]   ;;  %v87_v22 = vmul.f32 %v71_v4, %v71_v4  ;;  %v91_v23 = vmul.f32 %v89_v19, %v77_v18  ;;  %v88_v24 = vmul.f32 %v72_v5, %v72_v5  ;;  %v92_v25 = vmul.f32 %v90_v21, %v78_v20  ;;  %v145_v26 = vpop.eup %144 }
  0x38   :  { %v147_v28 = vpop.eup %146  ;;  %v84_v29 = vmul.f32 0.6931472, %v145_v26  ;;  %s250_s21 = smov [#allocation7]  }
  0x39   :  { %v93_v27 = vsel %vm65_vm0, %v87_v22, %v91_v23  ;;  %v94_v30 = vsel %vm66_vm1, %v88_v24, %v92_v25  ;;  %v86_v31 = vmul.f32 0.6931472, %v147_v28  ;;  %s111_s22 = sshll.u32 %s250_s21, 4  ;;  %s112_s22 = int_to_ptr.vmem [resolvable:$true] %s111_s22 }
  0x3a   :  { %v95_v32 = vmul.f32 %v93_v27, %v84_v29  ;;  %s214_s3 = scalar_lea.vmem %s112_s22, 128  ;;  %p219_p11 = scmp.lt.s32.totalorder %s112_s22, %s112_s22 }
  0x3b   :  { %v96_v33 = vmul.f32 %v94_v30, %v86_v31  ;;  %p215_p10 = scmp.ne.s32.totalorder %s112_s22, %s214_s3  ;;  %p220_p12 = scmp.lt.s32.totalorder %s214_s3, %s214_s3 }
  0x3d   :  { %v98_v34 = vadd.f32 %v96_v33, %v95_v32  ;;  %p221_p13 = por %p220_p12, %p219_p11 }
  0x3f   :  { %100 = vst [vmem:[#allocation7] sm:$0xff] %v98_v34  ;;  %p222_p0 = pnand %p221_p13, %p215_p10 }
  0x41   :  { %225 = shalt.err (!%p222_p0)
}
  0x42   :  { %s226_s25 = scalar_lea.hbm %s327_s2, 128 }
  0x43   :  { %p227_p1 = scmp.ne.s32.totalorder %s327_s2, %s226_s25  ;;  %p230_p2 = scmp.lt.u32.totalorder %s226_s25, %s327_s2 }
  0x45   :  { %p232_p3 = pnand %p230_p2, %p227_p1 }
  0x47   :  { %235 = shalt.err (!%p232_p3)
}
  0x48   :  { %114 = dma.vmem_to_hbm [thread:$0]  %s112_s22, 128, %s327_s2, [#allocation4]  }
  0x49   :  { %240 = dma.done.wait [#allocation4], 128  }
  0x4a   :  { %241 = vsyncadd [#allocation4], 4294967168 }
  0x4b   :  { %242 = dma.done.wait [#allocation9], 128  }
  0x4c   :  { %243 = vsyncadd [#allocation9], 4294967168 }
  0x4d   :  { %131 = vsyncpa [#allocation3], 1 }
  0x4e   :  { %132 = vsyncpa [#allocation6], 1 }
  0x4f   :  { %133 = vsyncpa [#allocation4], 1 }
  0x50   :  { %134 = vsyncpa [#allocation9], 1 }

</bundles_post_ra>
